<compile_context>
chip_gen: v7x
topology: tpu7x:2x2x1
jax: 0.10.0
libtpu: 0.0.40
codegen_flags: <defaults>
</compile_context>

<pallas_src>
import numpy as np
import jax
import jax.numpy as jnp
from jax.experimental import pallas as pl
from jax.experimental.pallas import tpu as pltpu

HIDDEN = 768
NUM_CLASSES = 3          # bert_layer output size
NUM_BIN_HEADS = 4        # start_layer1, end_layer1, start_layer2, end_layer2
PACKED = 8               # 3 logits + 4 sigmoid heads + 1 zero pad (sublane-aligned)


def _round_up(n, m):
    return ((n + m - 1) // m) * m


# ----------------------------- Pallas kernel ------------------------------- #
def heads_kernel(x_ref, w_ref, b_ref, out_ref):
    """Fused 5-head kernel, lane-dense over tokens.

    x_ref  : (H, tm)      bf16 block of transposed hidden states (tokens on lanes)
    w_ref  : (PACKED, H)  bf16 packed head weights [bert(3) | Bs Be Is Ie | pad]
    b_ref  : (PACKED, 1)  f32 packed biases (pad row = 0)
    out_ref: (PACKED, tm) f32: rows 0..2 raw logits, rows 3..6 sigmoid heads
    """
    y = jnp.dot(w_ref[...], x_ref[...], preferred_element_type=jnp.float32)
    y = y + b_ref[...]                                        # (PACKED, tm) f32
    # Sigmoid only on the four binary-head rows.  y is ~8 dense vregs, so the
    # iota + compares + select cost ~32 VALU ops per tile (noise).
    row = jax.lax.broadcasted_iota(jnp.int32, y.shape, dimension=0)
    is_sig = (row >= NUM_CLASSES) & (row < NUM_CLASSES + NUM_BIN_HEADS)
    out_ref[...] = jnp.where(is_sig, jax.nn.sigmoid(y), y).astype(out_ref.dtype)


def run_heads(x_t, w_packed, b_packed, *, tm_max=1024):
    """x_t: (H, N) bf16 hidden states (tokens on the lane axis).

    Returns (PACKED, N) f32 packed head outputs.
    """
    H, N = x_t.shape
    assert H == HIDDEN
    # Token tile: large enough to amortize the ~0.35us/step overhead, but capped
    # so the grid keeps >=2 "parallel" steps (v7x has 2 TensorCores). 768 x 1024
    # bf16 = 1.5 MiB/block (3 MiB double-buffered) - far under scoped VMEM on
    # v5e/v6e/v7x.  No padding: the ragged last block's store is masked by Pallas.
    tm = min(tm_max, max(128, _round_up(pl.cdiv(N, 2), 128)))
    grid = (pl.cdiv(N, tm),)

    cost = pl.CostEstimate(
        flops=2 * N * H * PACKED,
        transcendentals=N * PACKED,
        bytes_accessed=N * H * 2 + N * PACKED * 4 + H * PACKED * 2 + PACKED * 4,
    )

    return pl.pallas_call(
        heads_kernel,
        out_shape=jax.ShapeDtypeStruct((PACKED, N), jnp.float32),
        grid_spec=pltpu.PrefetchScalarGridSpec(
            num_scalar_prefetch=0,
            grid=grid,
            in_specs=[
                pl.BlockSpec((H, tm), lambda i: (0, i)),
                pl.BlockSpec((PACKED, H), lambda i: (0, 0)),
                pl.BlockSpec((PACKED, 1), lambda i: (0, 0)),
            ],
            out_specs=pl.BlockSpec((PACKED, tm), lambda i: (0, i)),
        ),
        compiler_params=pltpu.CompilerParams(
            dimension_semantics=("parallel",),
        ),
        cost_estimate=cost,
    )(x_t, w_packed, b_packed)


# ------------------------------ Model wrapper ------------------------------ #
class BioSEPBERTModel:
    """JAX re-implementation of BioSEPBERT_Model's forward pass."""

    def __init__(self, key, vocab_size=128, type_vocab_size=2, max_pos=512):
        keys = jax.random.split(key, 8)
        scale = 0.02
        # Synthetic deterministic "encoder" parameters (stub for the injected BERT).
        self.word_emb = scale * jax.random.normal(keys[0], (vocab_size, HIDDEN), jnp.float32)
        self.type_emb = scale * jax.random.normal(keys[1], (type_vocab_size, HIDDEN), jnp.float32)
        self.pos_emb = scale * jax.random.normal(keys[2], (max_pos, HIDDEN), jnp.float32)
        self.ln_gamma = jnp.ones((HIDDEN,), jnp.float32)
        self.ln_beta = jnp.zeros((HIDDEN,), jnp.float32)

        # Head parameters (same shapes as nn.Linear(768, out)).
        def linear_params(k, out_features):
            kw, kb = jax.random.split(k)
            bound = 1.0 / jnp.sqrt(HIDDEN)
            w = jax.random.uniform(kw, (out_features, HIDDEN), jnp.float32, -bound, bound)
            b = jax.random.uniform(kb, (out_features,), jnp.float32, -bound, bound)
            return w, b

        self.w_bert, self.b_bert = linear_params(keys[3], NUM_CLASSES)
        self.w_start1, self.b_start1 = linear_params(keys[4], 1)
        self.w_start2, self.b_start2 = linear_params(keys[5], 1)
        self.w_end1, self.b_end1 = linear_params(keys[6], 1)
        self.w_end2, self.b_end2 = linear_params(keys[7], 1)

        # Pack all heads into one (PACKED, H) weight / (PACKED, 1) bias so the
        # kernel does a single W @ X^T matmul:
        #   rows 0..2 = bert_layer, 3 = B_start, 4 = B_end, 5 = I_start,
        #   6 = I_end, 7 = zero pad.
        w_cat = jnp.concatenate(
            [self.w_bert, self.w_start1, self.w_end1, self.w_start2, self.w_end2,
             jnp.zeros((1, HIDDEN), jnp.float32)], axis=0)            # (PACKED, H)
        self.w_packed = w_cat.astype(jnp.bfloat16)                    # (PACKED, H) bf16
        self.b_packed = jnp.concatenate(
            [self.b_bert, self.b_start1, self.b_end1, self.b_start2, self.b_end2,
             jnp.zeros((1,), jnp.float32)]).reshape(PACKED, 1)        # (PACKED, 1) f32

        # Jit the whole encoder + heads path so the bf16 cast + transpose fuses
        # with the producer instead of being a standalone HBM pass.
        self._jit_heads = jax.jit(self._forward_heads)

    def encode(self, input_ids, token_type_ids, attention_mask):
        # Synthetic encoder stub: embedding sum + layernorm, masked by attention.
        B, S = input_ids.shape
        h = (self.word_emb[input_ids]
             + self.type_emb[token_type_ids]
             + self.pos_emb[:S][None, :, :])
        mean = jnp.mean(h, axis=-1, keepdims=True)
        var = jnp.var(h, axis=-1, keepdims=True)
        h = (h - mean) * jax.lax.rsqrt(var + 1e-12) * self.ln_gamma + self.ln_beta
        return h * attention_mask[..., None].astype(h.dtype)

    def _forward_heads(self, input_ids, token_type_ids, attention_mask):
        h = self.encode(input_ids, token_type_ids, attention_mask)    # (B, S, H) f32
        B, S, H = h.shape
        # Producer emits bf16 already transposed to (H, N): one fused XLA pass,
        # and the kernel sees tokens on the lane (fast) axis.
        x_t = h.reshape(B * S, H).T.astype(jnp.bfloat16)              # (H, N) bf16
        out = run_heads(x_t, self.w_packed, self.b_packed)            # (PACKED, N) f32

        bert_layer = out[:NUM_CLASSES].T.reshape(B, S, NUM_CLASSES)
        B_start = out[3].reshape(B, S)
        B_end = out[4].reshape(B, S)
        I_start = out[5].reshape(B, S)
        I_end = out[6].reshape(B, S)
        return bert_layer, B_start, B_end, I_start, I_end

    def forward(self, input_ids, token_type_ids, attention_mask,
                labels=None, label_mask=None):
        bert_layer, B_start, B_end, I_start, I_end = self._jit_heads(
            input_ids, token_type_ids, attention_mask)
        loss = None
        # TODO(synk): masked BCE/CE training loss uses boolean-indexed gathers with
        # data-dependent shapes (B_start[active], ...) — not implemented here.
        return loss, bert_layer, B_start, B_end, I_start, I_end


# --------------------------------- Driver ---------------------------------- #
if __name__ == "__main__":
    key = jax.random.PRNGKey(0)
    k_model, k_ids, k_tt = jax.random.split(key, 3)

    model = BioSEPBERTModel(k_model, vocab_size=128)

    BATCH, SEQ = 2, 128
    input_ids = jax.random.randint(k_ids, (BATCH, SEQ), 0, 128, dtype=jnp.int32)
    token_type_ids = jax.random.randint(k_tt, (BATCH, SEQ), 0, 2, dtype=jnp.int32)
    attention_mask = jnp.ones((BATCH, SEQ), dtype=jnp.int32)

    loss, bert_layer, B_start, B_end, I_start, I_end = model.forward(
        input_ids, token_type_ids, attention_mask
    )
    jax.block_until_ready((bert_layer, B_start, B_end, I_start, I_end))

    # ---------------------------- correctness ------------------------------ #
    h = model.encode(input_ids, token_type_ids, attention_mask)        # (B, S, H) f32

    # (1) Tight check against the same bf16-input / f32-accumulate math path.
    xb = h.reshape(-1, HIDDEN).astype(jnp.bfloat16)
    ref8 = (jnp.dot(xb, model.w_packed.T, preferred_element_type=jnp.float32)
            + model.b_packed.reshape(1, PACKED))                       # (N, PACKED)
    ref_bert_bf = ref8[:, :NUM_CLASSES].reshape(BATCH, SEQ, NUM_CLASSES)
    ref_sig_bf = jax.nn.sigmoid(ref8[:, NUM_CLASSES:NUM_CLASSES + NUM_BIN_HEADS])
    ref_sig_bf = ref_sig_bf.reshape(BATCH, SEQ, NUM_BIN_HEADS)
    assert jnp.allclose(bert_layer, ref_bert_bf, atol=5e-3, rtol=5e-3)
    assert jnp.allclose(B_start, ref_sig_bf[..., 0], atol=5e-3, rtol=5e-3)
    assert jnp.allclose(B_end, ref_sig_bf[..., 1], atol=5e-3, rtol=5e-3)
    assert jnp.allclose(I_start, ref_sig_bf[..., 2], atol=5e-3, rtol=5e-3)
    assert jnp.allclose(I_end, ref_sig_bf[..., 3], atol=5e-3, rtol=5e-3)

    # (2) Looser sanity check against the full-f32 reference (bf16 streaming of
    #     the hidden states introduces ~1e-3-level error on the 768-wide dot).
    ref_bert = h @ model.w_bert.T + model.b_bert
    ref_Bs = jax.nn.sigmoid((h @ model.w_start1.T + model.b_start1)[..., 0])
    ref_Be = jax.nn.sigmoid((h @ model.w_end1.T + model.b_end1)[..., 0])
    ref_Is = jax.nn.sigmoid((h @ model.w_start2.T + model.b_start2)[..., 0])
    ref_Ie = jax.nn.sigmoid((h @ model.w_end2.T + model.b_end2)[..., 0])
    assert jnp.allclose(bert_layer, ref_bert, atol=3e-2, rtol=3e-2)
    assert jnp.allclose(B_start, ref_Bs, atol=2e-2, rtol=2e-2)
    assert jnp.allclose(B_end, ref_Be, atol=2e-2, rtol=2e-2)
    assert jnp.allclose(I_start, ref_Is, atol=2e-2, rtol=2e-2)
    assert jnp.allclose(I_end, ref_Ie, atol=2e-2, rtol=2e-2)

    assert bert_layer.shape == (BATCH, SEQ, NUM_CLASSES)
    assert B_start.shape == (BATCH, SEQ)

    print("KERNEL_OK")
</pallas_src>

<mosaic_0001>
module attributes {stable_mosaic.version = 11 : i64} {
  func.func @heads_kernel(%arg0: i32, %arg1: memref<768x128xbf16, #tpu.memory_space<vmem>>, %arg2: memref<8x768xbf16, #tpu.memory_space<vmem>>, %arg3: memref<8x1xf32, #tpu.memory_space<vmem>>, %arg4: memref<8x128xf32, #tpu.memory_space<vmem>>) attributes {dimension_semantics = [#tpu.dimension_semantics<parallel>], iteration_bounds = array<i64: 2>, scalar_prefetch = 0 : i64, scratch_operands = 0 : i64, tpu.core_type = #tpu.core_type<tc>, window_params = [{transform_indices = @transform_0, window_bounds = array<i64: 768, 128>}, {pipeline_mode = #tpu.pipeline_mode<synchronous>, transform_indices = @transform_1, window_bounds = array<i64: 8, 768>}, {pipeline_mode = #tpu.pipeline_mode<synchronous>, transform_indices = @transform_2, window_bounds = array<i64: 8, 1>}, {transform_indices = @transform_3, window_bounds = array<i64: 8, 128>}]} {
    %c0 = arith.constant 0 : index
    %c0_0 = arith.constant 0 : index
    %0 = vector.load %arg2[%c0, %c0_0] : memref<8x768xbf16, #tpu.memory_space<vmem>>, vector<8x768xbf16>
    %c0_1 = arith.constant 0 : index
    %c0_2 = arith.constant 0 : index
    %1 = vector.load %arg1[%c0_1, %c0_2] : memref<768x128xbf16, #tpu.memory_space<vmem>>, vector<768x128xbf16>
    %cst = arith.constant dense<0.000000e+00> : vector<8x128xf32>
    %2 = tpu.matmul %0, %1, %cst {dimension_numbers = #tpu.dot_dimension_numbers<[1], [0], [0], [1], [0, 0, 1, 1], [], []>} : vector<8x768xbf16>, vector<768x128xbf16>, vector<8x128xf32> -> vector<8x128xf32>
    %c0_3 = arith.constant 0 : index
    %c0_4 = arith.constant 0 : index
    %3 = vector.load %arg3[%c0_3, %c0_4] : memref<8x1xf32, #tpu.memory_space<vmem>>, vector<8x1xf32>
    %4 = vector.broadcast %3 : vector<8x1xf32> to vector<8x128xf32>
    %5 = arith.addf %2, %4 : vector<8x128xf32>
    %6 = tpu.iota {dimensions = array<i32: 0>} : vector<8x128xi32>
    %c3_i32 = arith.constant 3 : i32
    %7 = vector.broadcast %c3_i32 : i32 to vector<8x128xi32>
    %8 = arith.cmpi sge, %6, %7 : vector<8x128xi32>
    %c7_i32 = arith.constant 7 : i32
    %9 = vector.broadcast %c7_i32 : i32 to vector<8x128xi32>
    %10 = arith.cmpi slt, %6, %9 : vector<8x128xi32>
    %11 = arith.andi %8, %10 : vector<8x128xi1>
    %12 = arith.negf %5 : vector<8x128xf32>
    %13 = math.exp %12 : vector<8x128xf32>
    %cst_5 = arith.constant 1.000000e+00 : f32
    %14 = vector.broadcast %cst_5 : f32 to vector<8x128xf32>
    %15 = arith.addf %14, %13 : vector<8x128xf32>
    %16 = arith.divf %14, %15 : vector<8x128xf32>
    %17 = arith.select %11, %16, %5 : vector<8x128xi1>, vector<8x128xf32>
    %c0_6 = arith.constant 0 : index
    %c0_7 = arith.constant 0 : index
    %18 = vector.load %arg4[%c0_6, %c0_7] : memref<8x128xf32, #tpu.memory_space<vmem>>, vector<8x128xf32>
    tpu.vector_store %arg4[%c0_6, %c0_7], %17 {strides = array<i32>} : memref<8x128xf32, #tpu.memory_space<vmem>>, vector<8x128xf32>,
    return
  }
  func.func @transform_0(%arg0: i32) -> (i32, i32) {
    %c0_i32 = arith.constant 0 : i32
    %c0_i32_0 = arith.constant 0 : i32
    return %c0_i32, %arg0 : i32, i32
  }
  func.func @transform_1(%arg0: i32) -> (i32, i32) {
    %c0_i32 = arith.constant 0 : i32
    %c0_i32_0 = arith.constant 0 : i32
    %c0_i32_1 = arith.constant 0 : i32
    return %c0_i32, %c0_i32_0 : i32, i32
  }
  func.func @transform_2(%arg0: i32) -> (i32, i32) {
    %c0_i32 = arith.constant 0 : i32
    %c0_i32_0 = arith.constant 0 : i32
    %c0_i32_1 = arith.constant 0 : i32
    return %c0_i32, %c0_i32_0 : i32, i32
  }
  func.func @transform_3(%arg0: i32) -> (i32, i32) {
    %c0_i32 = arith.constant 0 : i32
    %c0_i32_0 = arith.constant 0 : i32
    return %c0_i32, %arg0 : i32, i32
  }
}

</mosaic_0001>

<bundles_post_ra>
// kernel: _forward_heads.1
= control target key start
LH: loop header
LB: loop body
LE: loop exit
PB: predicated region body
PF: predicated region fallthrough
CT: control target
= control target key end

     0   :  { %s1458_s12 = smov 0   ;;  %s1460_s13 = smov 0   ;;  %s1782_s0 = inlined_call_operand.vmem [shape: bf16[768,256], index: 0, kind: input, shape index: {}]   ;;  %s1783_s1 = inlined_call_operand.vmem [shape: bf16[8,768], index: 1, kind: input, shape index: {}]   ;;  %s1784_s2 = inlined_call_operand.vmem [shape: f32[8,1], index: 2, kind: input, shape index: {}]   ;;  %s1785_s3 = inlined_call_operand.vmem [shape: f32[8,256], index: 3, kind: output, shape index: {}]  }
   0x1   :  { %s1462_s14 = smov 0  }
   0x2 LB: > { %s1197_s15 = sadd.s32 4294967295, %s1435_s14   ;;  %s1475_s16 = sadd.s32 1, %s1435_s14   ;;  %s1435_s14 = sphi %s1462_s14, %s1788_s14   ;;  %s1431_s13 = sphi %s1460_s13, %s1787_s13   ;;  %s1427_s12 = sphi %s1458_s12, %s1786_s12  }
   0x3   : > { %s17_s17 = ssub.s32 %s1435_s14, %s1475_s16  ;;  %s20_s18 = sadd.s32 1, %s1431_s13 }
   0x4   : > { %p18_p0 = scmp.eq.s32.totalorder %s17_s17, 0  ;;  %p27_p1 = scmp.ne.s32.totalorder %s1431_s13, %s1427_s12 }
   0x5   : > { %p28_p2 = scmp.eq.s32.totalorder %s1435_s14, 0  ;;  %p1200_p4 = scmp.ge.s32.totalorder %s1435_s14, 2 }
   0x6   : > { %s1484_s19 = scalar_select %p18_p0, %s1431_s13, %s20_s18  }
   0x7   : > { %p29_p3 = por %p28_p2, %p27_p1  ;;  %127 = sbr.rel (%p1200_p4) target bundleno = 82 (0x52), region = 24 }
   0xe   : > { %130 = sbr.rel (!%p29_p3) target bundleno = 82 (0x52), region = 28  ;;  %s132_s20 = sand.u32 (%p29_p3), 1, %s1431_s13  }
   0xf   : > { %s1201_s21 = sshll.u32 (%p29_p3), %s1435_s14, 2  ;;  %s1327_s22 = smul.u32 (%p29_p3), 384, %s132_s20 }
  0x10   : > { %s1492_s25 = scalar_lea.vmem (%p29_p3), %s1782_s0, %s1201_s21 }
  0x11   : > { %v152_v0 = vld [vmem:[%s1492_s25] sm:$0xf] (%p29_p3)  ;;  %v154_v1 = vld [vmem:[%s1492_s25 + $0x8] sm:$0xf] (%p29_p3)  ;;  %v156_v2 = vld [vmem:[%s1492_s25 + $0x10] sm:$0xf] (%p29_p3) }
  0x12   : > { %v158_v3 = vld [vmem:[%s1492_s25 + $0x18] sm:$0xf] (%p29_p3)  ;;  %v160_v4 = vld [vmem:[%s1492_s25 + $0x20] sm:$0xf] (%p29_p3)  ;;  %s1499_s26 = scalar_lea.vmem (%p29_p3), [#allocation2], %s1327_s22 }
  0x13   : > { %153 = vst [vmem:[%s1499_s26] sm:$0xf] (%p29_p3), %v152_v0  ;;  %155 = vst [vmem:[%s1499_s26 + $0x4] sm:$0xf] (%p29_p3), %v154_v1  ;;  %v162_v5 = vld [vmem:[%s1492_s25 + $0x28] sm:$0xf] (%p29_p3) }
  0x14   : > { %157 = vst [vmem:[%s1499_s26 + $0x8] sm:$0xf] (%p29_p3), %v156_v2  ;;  %159 = vst [vmem:[%s1499_s26 + $0xc] sm:$0xf] (%p29_p3), %v158_v3  ;;  %v164_v6 = vld [vmem:[%s1492_s25 + $0x30] sm:$0xf] (%p29_p3) }
  0x15   : > { %161 = vst [vmem:[%s1499_s26 + $0x10] sm:$0xf] %v160_v4  ;;  %v166_v7 = vld [vmem:[%s1492_s25 + $0x38] sm:$0xf]  ;;  %163 = vst [vmem:[%s1499_s26 + $0x14] sm:$0xf] %v162_v5 }
  0x16   : > { %165 = vst [vmem:[%s1499_s26 + $0x18] sm:$0xf] %v164_v6  ;;  %167 = vst [vmem:[%s1499_s26 + $0x1c] sm:$0xf] %v166_v7  ;;  %v168_v8 = vld [vmem:[%s1492_s25 + $0x40] sm:$0xf] }
  0x17   : > { %v170_v9 = vld [vmem:[%s1492_s25 + $0x48] sm:$0xf]  ;;  %v172_v10 = vld [vmem:[%s1492_s25 + $0x50] sm:$0xf]  ;;  %169 = vst [vmem:[%s1499_s26 + $0x20] sm:$0xf] %v168_v8 }
  0x18   : > { %171 = vst [vmem:[%s1499_s26 + $0x24] sm:$0xf] %v170_v9  ;;  %173 = vst [vmem:[%s1499_s26 + $0x28] sm:$0xf] %v172_v10  ;;  %v174_v11 = vld [vmem:[%s1492_s25 + $0x58] sm:$0xf] }
  0x19   : > { %v176_v12 = vld [vmem:[%s1492_s25 + $0x60] sm:$0xf]  ;;  %v178_v13 = vld [vmem:[%s1492_s25 + $0x68] sm:$0xf]  ;;  %175 = vst [vmem:[%s1499_s26 + $0x2c] sm:$0xf] %v174_v11 }
  0x1a   : > { %177 = vst [vmem:[%s1499_s26 + $0x30] sm:$0xf] %v176_v12  ;;  %179 = vst [vmem:[%s1499_s26 + $0x34] sm:$0xf] %v178_v13  ;;  %v180_v14 = vld [vmem:[%s1492_s25 + $0x70] sm:$0xf] }
  0x1b   : > { %v182_v15 = vld [vmem:[%s1492_s25 + $0x78] sm:$0xf]  ;;  %v184_v16 = vld [vmem:[%s1492_s25 + $0x80] sm:$0xf]  ;;  %181 = vst [vmem:[%s1499_s26 + $0x38] sm:$0xf] %v180_v14 }
  0x1c   : > { %183 = vst [vmem:[%s1499_s26 + $0x3c] sm:$0xf] %v182_v15  ;;  %185 = vst [vmem:[%s1499_s26 + $0x40] sm:$0xf] %v184_v16  ;;  %v186_v17 = vld [vmem:[%s1492_s25 + $0x88] sm:$0xf] }
  0x1d   : > { %v188_v18 = vld [vmem:[%s1492_s25 + $0x90] sm:$0xf]  ;;  %v190_v19 = vld [vmem:[%s1492_s25 + $0x98] sm:$0xf]  ;;  %187 = vst [vmem:[%s1499_s26 + $0x44] sm:$0xf] %v186_v17 }
  0x1e   : > { %189 = vst [vmem:[%s1499_s26 + $0x48] sm:$0xf] %v188_v18  ;;  %191 = vst [vmem:[%s1499_s26 + $0x4c] sm:$0xf] %v190_v19  ;;  %v192_v20 = vld [vmem:[%s1492_s25 + $0xa0] sm:$0xf] }
  0x1f   : > { %v194_v21 = vld [vmem:[%s1492_s25 + $0xa8] sm:$0xf]  ;;  %v196_v22 = vld [vmem:[%s1492_s25 + $0xb0] sm:$0xf]  ;;  %193 = vst [vmem:[%s1499_s26 + $0x50] sm:$0xf] %v192_v20 }
  0x20   : > { %195 = vst [vmem:[%s1499_s26 + $0x54] sm:$0xf] %v194_v21  ;;  %197 = vst [vmem:[%s1499_s26 + $0x58] sm:$0xf] %v196_v22  ;;  %v198_v23 = vld [vmem:[%s1492_s25 + $0xb8] sm:$0xf] }
  0x21   : > { %v200_v24 = vld [vmem:[%s1492_s25 + $0xc0] sm:$0xf]  ;;  %v202_v25 = vld [vmem:[%s1492_s25 + $0xc8] sm:$0xf]  ;;  %199 = vst [vmem:[%s1499_s26 + $0x5c] sm:$0xf] %v198_v23 }
  0x22   : > { %201 = vst [vmem:[%s1499_s26 + $0x60] sm:$0xf] %v200_v24  ;;  %203 = vst [vmem:[%s1499_s26 + $0x64] sm:$0xf] %v202_v25  ;;  %v204_v26 = vld [vmem:[%s1492_s25 + $0xd0] sm:$0xf] }
  0x23   : > { %v206_v27 = vld [vmem:[%s1492_s25 + $0xd8] sm:$0xf]  ;;  %v208_v28 = vld [vmem:[%s1492_s25 + $0xe0] sm:$0xf]  ;;  %205 = vst [vmem:[%s1499_s26 + $0x68] sm:$0xf] %v204_v26 }
  0x24   : > { %207 = vst [vmem:[%s1499_s26 + $0x6c] sm:$0xf] %v206_v27  ;;  %209 = vst [vmem:[%s1499_s26 + $0x70] sm:$0xf] %v208_v28  ;;  %v210_v29 = vld [vmem:[%s1492_s25 + $0xe8] sm:$0xf] }
  0x25   : > { %v212_v30 = vld [vmem:[%s1492_s25 + $0xf0] sm:$0xf]  ;;  %v214_v31 = vld [vmem:[%s1492_s25 + $0xf8] sm:$0xf]  ;;  %211 = vst [vmem:[%s1499_s26 + $0x74] sm:$0xf] %v210_v29 }
  0x26   : > { %213 = vst [vmem:[%s1499_s26 + $0x78] sm:$0xf] %v212_v30  ;;  %215 = vst [vmem:[%s1499_s26 + $0x7c] sm:$0xf] %v214_v31  ;;  %v216_v32 = vld [vmem:[%s1492_s25 + $0x100] sm:$0xf] }
  0x27   : > { %v218_v33 = vld [vmem:[%s1492_s25 + $0x108] sm:$0xf]  ;;  %v220_v34 = vld [vmem:[%s1492_s25 + $0x110] sm:$0xf]  ;;  %217 = vst [vmem:[%s1499_s26 + $0x80] sm:$0xf] %v216_v32 }
  0x28   : > { %219 = vst [vmem:[%s1499_s26 + $0x84] sm:$0xf] %v218_v33  ;;  %221 = vst [vmem:[%s1499_s26 + $0x88] sm:$0xf] %v220_v34  ;;  %v222_v35 = vld [vmem:[%s1492_s25 + $0x118] sm:$0xf] }
  0x29   : > { %v224_v36 = vld [vmem:[%s1492_s25 + $0x120] sm:$0xf]  ;;  %v226_v37 = vld [vmem:[%s1492_s25 + $0x128] sm:$0xf]  ;;  %223 = vst [vmem:[%s1499_s26 + $0x8c] sm:$0xf] %v222_v35 }
  0x2a   : > { %225 = vst [vmem:[%s1499_s26 + $0x90] sm:$0xf] %v224_v36  ;;  %227 = vst [vmem:[%s1499_s26 + $0x94] sm:$0xf] %v226_v37  ;;  %v228_v38 = vld [vmem:[%s1492_s25 + $0x130] sm:$0xf] }
  0x2b   : > { %v230_v39 = vld [vmem:[%s1492_s25 + $0x138] sm:$0xf]  ;;  %v232_v40 = vld [vmem:[%s1492_s25 + $0x140] sm:$0xf]  ;;  %229 = vst [vmem:[%s1499_s26 + $0x98] sm:$0xf] %v228_v38 }
  0x2c   : > { %231 = vst [vmem:[%s1499_s26 + $0x9c] sm:$0xf] %v230_v39  ;;  %233 = vst [vmem:[%s1499_s26 + $0xa0] sm:$0xf] %v232_v40  ;;  %v234_v41 = vld [vmem:[%s1492_s25 + $0x148] sm:$0xf] }
  0x2d   : > { %v236_v42 = vld [vmem:[%s1492_s25 + $0x150] sm:$0xf]  ;;  %v238_v43 = vld [vmem:[%s1492_s25 + $0x158] sm:$0xf]  ;;  %235 = vst [vmem:[%s1499_s26 + $0xa4] sm:$0xf] %v234_v41 }
  0x2e   : > { %237 = vst [vmem:[%s1499_s26 + $0xa8] sm:$0xf] %v236_v42  ;;  %239 = vst [vmem:[%s1499_s26 + $0xac] sm:$0xf] %v238_v43  ;;  %v240_v44 = vld [vmem:[%s1492_s25 + $0x160] sm:$0xf] }
  0x2f   : > { %v242_v45 = vld [vmem:[%s1492_s25 + $0x168] sm:$0xf]  ;;  %v244_v46 = vld [vmem:[%s1492_s25 + $0x170] sm:$0xf]  ;;  %241 = vst [vmem:[%s1499_s26 + $0xb0] sm:$0xf] %v240_v44 }
  0x30   : > { %243 = vst [vmem:[%s1499_s26 + $0xb4] sm:$0xf] %v242_v45  ;;  %245 = vst [vmem:[%s1499_s26 + $0xb8] sm:$0xf] %v244_v46  ;;  %v246_v47 = vld [vmem:[%s1492_s25 + $0x178] sm:$0xf] }
  0x31   : > { %v248_v48 = vld [vmem:[%s1492_s25 + $0x180] sm:$0xf]  ;;  %v250_v49 = vld [vmem:[%s1492_s25 + $0x188] sm:$0xf]  ;;  %247 = vst [vmem:[%s1499_s26 + $0xbc] sm:$0xf] %v246_v47 }
  0x32   : > { %249 = vst [vmem:[%s1499_s26 + $0xc0] sm:$0xf] %v248_v48  ;;  %251 = vst [vmem:[%s1499_s26 + $0xc4] sm:$0xf] %v250_v49  ;;  %v252_v50 = vld [vmem:[%s1492_s25 + $0x190] sm:$0xf] }
  0x33   : > { %v254_v51 = vld [vmem:[%s1492_s25 + $0x198] sm:$0xf]  ;;  %v256_v52 = vld [vmem:[%s1492_s25 + $0x1a0] sm:$0xf]  ;;  %253 = vst [vmem:[%s1499_s26 + $0xc8] sm:$0xf] %v252_v50 }
  0x34   : > { %255 = vst [vmem:[%s1499_s26 + $0xcc] sm:$0xf] %v254_v51  ;;  %257 = vst [vmem:[%s1499_s26 + $0xd0] sm:$0xf] %v256_v52  ;;  %v258_v53 = vld [vmem:[%s1492_s25 + $0x1a8] sm:$0xf] }
  0x35   : > { %v260_v54 = vld [vmem:[%s1492_s25 + $0x1b0] sm:$0xf]  ;;  %v262_v55 = vld [vmem:[%s1492_s25 + $0x1b8] sm:$0xf]  ;;  %259 = vst [vmem:[%s1499_s26 + $0xd4] sm:$0xf] %v258_v53 }
  0x36   : > { %261 = vst [vmem:[%s1499_s26 + $0xd8] sm:$0xf] %v260_v54  ;;  %263 = vst [vmem:[%s1499_s26 + $0xdc] sm:$0xf] %v262_v55  ;;  %v264_v56 = vld [vmem:[%s1492_s25 + $0x1c0] sm:$0xf] }
  0x37   : > { %v266_v57 = vld [vmem:[%s1492_s25 + $0x1c8] sm:$0xf]  ;;  %v268_v58 = vld [vmem:[%s1492_s25 + $0x1d0] sm:$0xf]  ;;  %265 = vst [vmem:[%s1499_s26 + $0xe0] sm:$0xf] %v264_v56 }
  0x38   : > { %267 = vst [vmem:[%s1499_s26 + $0xe4] sm:$0xf] %v266_v57  ;;  %269 = vst [vmem:[%s1499_s26 + $0xe8] sm:$0xf] %v268_v58  ;;  %v270_v59 = vld [vmem:[%s1492_s25 + $0x1d8] sm:$0xf] }
  0x39   : > { %v272_v60 = vld [vmem:[%s1492_s25 + $0x1e0] sm:$0xf]  ;;  %v274_v61 = vld [vmem:[%s1492_s25 + $0x1e8] sm:$0xf]  ;;  %271 = vst [vmem:[%s1499_s26 + $0xec] sm:$0xf] %v270_v59 }
  0x3a   : > { %273 = vst [vmem:[%s1499_s26 + $0xf0] sm:$0xf] %v272_v60  ;;  %275 = vst [vmem:[%s1499_s26 + $0xf4] sm:$0xf] %v274_v61  ;;  %v276_v62 = vld [vmem:[%s1492_s25 + $0x1f0] sm:$0xf] }
  0x3b   : > { %v278_v63 = vld [vmem:[%s1492_s25 + $0x1f8] sm:$0xf]  ;;  %v280_v0 = vld [vmem:[%s1492_s25 + $0x200] sm:$0xf]  ;;  %277 = vst [vmem:[%s1499_s26 + $0xf8] sm:$0xf] %v276_v62 }
  0x3c   : > { %279 = vst [vmem:[%s1499_s26 + $0xfc] sm:$0xf] %v278_v63  ;;  %281 = vst [vmem:[%s1499_s26 + $0x100] sm:$0xf] %v280_v0  ;;  %v282_v1 = vld [vmem:[%s1492_s25 + $0x208] sm:$0xf] }
  0x3d   : > { %v284_v2 = vld [vmem:[%s1492_s25 + $0x210] sm:$0xf]  ;;  %v286_v3 = vld [vmem:[%s1492_s25 + $0x218] sm:$0xf]  ;;  %283 = vst [vmem:[%s1499_s26 + $0x104] sm:$0xf] %v282_v1 }
  0x3e   : > { %285 = vst [vmem:[%s1499_s26 + $0x108] sm:$0xf] %v284_v2  ;;  %287 = vst [vmem:[%s1499_s26 + $0x10c] sm:$0xf] %v286_v3  ;;  %v288_v4 = vld [vmem:[%s1492_s25 + $0x220] sm:$0xf] }
  0x3f   : > { %v290_v5 = vld [vmem:[%s1492_s25 + $0x228] sm:$0xf]  ;;  %v292_v6 = vld [vmem:[%s1492_s25 + $0x230] sm:$0xf]  ;;  %289 = vst [vmem:[%s1499_s26 + $0x110] sm:$0xf] %v288_v4 }
  0x40   : > { %291 = vst [vmem:[%s1499_s26 + $0x114] sm:$0xf] %v290_v5  ;;  %293 = vst [vmem:[%s1499_s26 + $0x118] sm:$0xf] %v292_v6  ;;  %v294_v7 = vld [vmem:[%s1492_s25 + $0x238] sm:$0xf] }
  0x41   : > { %v296_v8 = vld [vmem:[%s1492_s25 + $0x240] sm:$0xf]  ;;  %v298_v9 = vld [vmem:[%s1492_s25 + $0x248] sm:$0xf]  ;;  %295 = vst [vmem:[%s1499_s26 + $0x11c] sm:$0xf] %v294_v7 }
  0x42   : > { %297 = vst [vmem:[%s1499_s26 + $0x120] sm:$0xf] %v296_v8  ;;  %299 = vst [vmem:[%s1499_s26 + $0x124] sm:$0xf] %v298_v9  ;;  %v300_v10 = vld [vmem:[%s1492_s25 + $0x250] sm:$0xf] }
  0x43   : > { %v302_v11 = vld [vmem:[%s1492_s25 + $0x258] sm:$0xf]  ;;  %v304_v12 = vld [vmem:[%s1492_s25 + $0x260] sm:$0xf]  ;;  %301 = vst [vmem:[%s1499_s26 + $0x128] sm:$0xf] %v300_v10 }
  0x44   : > { %303 = vst [vmem:[%s1499_s26 + $0x12c] sm:$0xf] %v302_v11  ;;  %305 = vst [vmem:[%s1499_s26 + $0x130] sm:$0xf] %v304_v12  ;;  %v306_v13 = vld [vmem:[%s1492_s25 + $0x268] sm:$0xf] }
  0x45   : > { %v308_v14 = vld [vmem:[%s1492_s25 + $0x270] sm:$0xf]  ;;  %v310_v15 = vld [vmem:[%s1492_s25 + $0x278] sm:$0xf]  ;;  %307 = vst [vmem:[%s1499_s26 + $0x134] sm:$0xf] %v306_v13 }
  0x46   : > { %309 = vst [vmem:[%s1499_s26 + $0x138] sm:$0xf] %v308_v14  ;;  %311 = vst [vmem:[%s1499_s26 + $0x13c] sm:$0xf] %v310_v15  ;;  %v312_v16 = vld [vmem:[%s1492_s25 + $0x280] sm:$0xf] }
  0x47   : > { %v314_v17 = vld [vmem:[%s1492_s25 + $0x288] sm:$0xf]  ;;  %v316_v18 = vld [vmem:[%s1492_s25 + $0x290] sm:$0xf]  ;;  %313 = vst [vmem:[%s1499_s26 + $0x140] sm:$0xf] %v312_v16 }
  0x48   : > { %315 = vst [vmem:[%s1499_s26 + $0x144] sm:$0xf] %v314_v17  ;;  %317 = vst [vmem:[%s1499_s26 + $0x148] sm:$0xf] %v316_v18  ;;  %v318_v19 = vld [vmem:[%s1492_s25 + $0x298] sm:$0xf] }
  0x49   : > { %v320_v20 = vld [vmem:[%s1492_s25 + $0x2a0] sm:$0xf]  ;;  %v322_v21 = vld [vmem:[%s1492_s25 + $0x2a8] sm:$0xf]  ;;  %319 = vst [vmem:[%s1499_s26 + $0x14c] sm:$0xf] %v318_v19 }
  0x4a   : > { %321 = vst [vmem:[%s1499_s26 + $0x150] sm:$0xf] %v320_v20  ;;  %323 = vst [vmem:[%s1499_s26 + $0x154] sm:$0xf] %v322_v21  ;;  %v324_v22 = vld [vmem:[%s1492_s25 + $0x2b0] sm:$0xf] }
  0x4b   : > { %v326_v23 = vld [vmem:[%s1492_s25 + $0x2b8] sm:$0xf]  ;;  %v328_v24 = vld [vmem:[%s1492_s25 + $0x2c0] sm:$0xf]  ;;  %325 = vst [vmem:[%s1499_s26 + $0x158] sm:$0xf] %v324_v22 }
  0x4c   : > { %327 = vst [vmem:[%s1499_s26 + $0x15c] sm:$0xf] %v326_v23  ;;  %329 = vst [vmem:[%s1499_s26 + $0x160] sm:$0xf] %v328_v24  ;;  %v330_v25 = vld [vmem:[%s1492_s25 + $0x2c8] sm:$0xf] }
  0x4d   : > { %v332_v26 = vld [vmem:[%s1492_s25 + $0x2d0] sm:$0xf]  ;;  %v334_v27 = vld [vmem:[%s1492_s25 + $0x2d8] sm:$0xf]  ;;  %331 = vst [vmem:[%s1499_s26 + $0x164] sm:$0xf] %v330_v25 }
  0x4e   : > { %333 = vst [vmem:[%s1499_s26 + $0x168] sm:$0xf] %v332_v26  ;;  %335 = vst [vmem:[%s1499_s26 + $0x16c] sm:$0xf] %v334_v27  ;;  %v336_v28 = vld [vmem:[%s1492_s25 + $0x2e0] sm:$0xf] }
  0x4f   : > { %v338_v29 = vld [vmem:[%s1492_s25 + $0x2e8] sm:$0xf]  ;;  %v340_v30 = vld [vmem:[%s1492_s25 + $0x2f0] sm:$0xf]  ;;  %337 = vst [vmem:[%s1499_s26 + $0x170] sm:$0xf] %v336_v28 }
  0x50   : > { %339 = vst [vmem:[%s1499_s26 + $0x174] sm:$0xf] %v338_v29  ;;  %341 = vst [vmem:[%s1499_s26 + $0x178] sm:$0xf] %v340_v30  ;;  %v342_v31 = vld [vmem:[%s1492_s25 + $0x2f8] sm:$0xf] }
  0x51   : > { %343 = vst [vmem:[%s1499_s26 + $0x17c] sm:$0xf] %v342_v31 }
  0x52 PF: > { %p1202_p5 = scmp.ge.s32.totalorder %s1435_s14, 1  ;;  %p557_p6 = scmp.lt.s32.totalorder %s1435_s14, 3 }
  0x54   : > { %p558_p7 = pnand %p1202_p5, %p557_p6 }
  0x55   : > { %s564_s27 = sand.u32 (!%p558_p7), 1, %s1427_s12   ;;  %v1694_v32 = vld [vmem:[%s1783_s1] sm:$0xff] (!%p558_p7)  ;;  %v1699_v33 = vld [vmem:[%s1783_s1 + $0x8] sm:$0xff] (!%p558_p7)  ;;  %v1437_v36 = vmov (!%p558_p7), 0   ;;  %v593_v1 = vld [vmem:[%s1783_s1 + $0x10] sm:$0xff] (!%p558_p7)  ;;  %p586_p8 = scmp.lt.s32.totalorder (!%p558_p7), %s1197_s15, 1 }
  0x56   : > { %561 = sbr.rel (%p558_p7) target bundleno = 400 (0x190), region = 69  ;;  %v1205_v34 = vcombine.high (!%p558_p7), %v1694_v32, %v1694_v32  ;;  %v1207_v35 = vcombine.high (!%p558_p7), %v1699_v33, %v1699_v33  ;;  %1354 = vset.pattern.permute.xlu0 (!%p558_p7), %v1437_v36  ;;  %v690_v37 = vld [vmem:[%s1784_s2] sm:$0xff] (!%p558_p7)  ;;  %v1204_v6 = vcombine.low (!%p558_p7), %v1694_v32, %v1694_v32  ;;  %v1209_v8 = vcombine.high (!%p558_p7), %v593_v1, %v593_v1 }
  0x57   : > { %s1328_s5 = smul.u32 (!%p558_p7), 384, %s564_s27  ;;  %693 = vperm.xlu0 (!%p558_p7), %1354, %v690_v37   ;;  %v1206_v10 = vcombine.low (!%p558_p7), %v1699_v33, %v1699_v33  ;;  %v1208_v26 = vcombine.low (!%p558_p7), %v593_v1, %v593_v1 }
  0x58   : > { %1037 = vmatprep.mubr.bf16.mxu0 (!%p558_p7), %v1205_v34  ;;  %1077 = vmatprep.mubr.bf16.mxu1 (!%p558_p7), %v1207_v35 }
  0x59   : > { %s1708_s8 = scalar_lea.vmem (!%p558_p7), [#allocation2], %s1328_s5 }
  0x5a   : > { %v1355_v38 = vld [vmem:[%s1708_s8 + $0x40] sm:$0xff] (!%p558_p7)   ;;  %v1359_v42 = vld [vmem:[%s1708_s8 + $0x48] sm:$0xff] (!%p558_p7)   ;;  %v1363_v46 = vld [vmem:[%s1708_s8 + $0x50] sm:$0xff] (!%p558_p7)  }
  0x5b   : > { %v1356_v39 = vld [vmem:[%s1708_s8] sm:$0xff] (!%p558_p7)   ;;  %1261 = vmatprep.subr.bf16.mxu0 (!%p558_p7), %v1355_v38  ;;  %v1360_v43 = vld [vmem:[%s1708_s8 + $0x8] sm:$0xff] (!%p558_p7)   ;;  %v1364_v47 = vld [vmem:[%s1708_s8 + $0x10] sm:$0xff] (!%p558_p7)  }
  0x5c   : > { %v1357_v40 = vld [vmem:[%s1708_s8 + $0xc0] sm:$0xff] (!%p558_p7)   ;;  %1262 = vmatpush3.bf16.msra.mxu0 (!%p558_p7), %v1356_v39  ;;  %v1361_v44 = vld [vmem:[%s1708_s8 + $0xc8] sm:$0xff] (!%p558_p7)   ;;  %v1365_v48 = vld [vmem:[%s1708_s8 + $0xd0] sm:$0xff] (!%p558_p7)  }
  0x5d   : > { %v1358_v41 = vld [vmem:[%s1708_s8 + $0x80] sm:$0xff]   ;;  %1283 = vmatprep.subr.bf16.mxu1 %v1357_v40  ;;  %1263 = vmatprep.subr.bf16.mxu0 %v1359_v42  ;;  %v1362_v45 = vld [vmem:[%s1708_s8 + $0x88] sm:$0xff]   ;;  %v1366_v49 = vld [vmem:[%s1708_s8 + $0x90] sm:$0xff]   ;;  %s1790_s15 = smov (!%p586_p8, %s1197_s15), 1 }
  0x5e   : > { %1284 = vmatpush3.bf16.msra.mxu1 %v1358_v41  ;;  %v1367_v50 = vld [vmem:[%s1708_s8 + $0x58] sm:$0xff]   ;;  %v1371_v54 = vld [vmem:[%s1708_s8 + $0x60] sm:$0xff]   ;;  %v1375_v58 = vld [vmem:[%s1708_s8 + $0x68] sm:$0xff]   ;;  %s1203_s11 = sshll.u32 %s1790_s15, 3 }
  0x5f   : > { %1285 = vmatprep.subr.bf16.mxu1 %v1361_v44  ;;  %v1368_v51 = vld [vmem:[%s1708_s8 + $0x18] sm:$0xff]   ;;  %v1372_v55 = vld [vmem:[%s1708_s8 + $0x20] sm:$0xff]   ;;  %v1376_v59 = vld [vmem:[%s1708_s8 + $0x28] sm:$0xff]   ;;  %s589_s18 = scalar_lea.vmem %s1785_s3, %s1203_s11 }
  0x60   : > { %1264 = vmatpush3.bf16.msra.mxu0 %v1360_v43  ;;  %v1369_v52 = vld [vmem:[%s1708_s8 + $0xd8] sm:$0xff]   ;;  %v1373_v56 = vld [vmem:[%s1708_s8 + $0xe0] sm:$0xff]   ;;  %v1377_v60 = vld [vmem:[%s1708_s8 + $0xe8] sm:$0xff]  }
  0x61   : > { %1265 = vmatprep.subr.bf16.mxu0 %v1363_v46  ;;  %v1370_v53 = vld [vmem:[%s1708_s8 + $0x98] sm:$0xff]   ;;  %v1374_v57 = vld [vmem:[%s1708_s8 + $0xa0] sm:$0xff]   ;;  %v1378_v61 = vld [vmem:[%s1708_s8 + $0xa8] sm:$0xff]  }
  0x62   : > { %1286 = vmatpush3.bf16.msra.mxu1 %v1362_v45  ;;  %v1379_v62 = vld [vmem:[%s1708_s8 + $0x70] sm:$0xff]   ;;  %v1383_v3 = vld [vmem:[%s1708_s8 + $0x78] sm:$0xff]   ;;  %v1389_v9 = vld [vmem:[%s1708_s8 + $0x140] sm:$0xff]  }
  0x63   : > { %1287 = vmatprep.subr.bf16.mxu1 %v1365_v48  ;;  %v1380_v63 = vld [vmem:[%s1708_s8 + $0x30] sm:$0xff]   ;;  %v1384_v4 = vld [vmem:[%s1708_s8 + $0x38] sm:$0xff]   ;;  %v1392_v11 = vld [vmem:[%s1708_s8 + $0x100] sm:$0xff]   ;;  %v1125_v48 = vlaneseq }
  0x64   : > { %1266 = vmatpush3.bf16.msra.mxu0 %v1364_v47  ;;  %v1381_v0 = vld [vmem:[%s1708_s8 + $0xf0] sm:$0xff]   ;;  %v1385_v5 = vld [vmem:[%s1708_s8 + $0xf8] sm:$0xff]   ;;  %v1393_v12 = vld [vmem:[%s1708_s8 + $0x148] sm:$0xff]  }
  0x65   : > { %1267 = vmatprep.subr.bf16.mxu0 %v1367_v50  ;;  %v1382_v2 = vld [vmem:[%s1708_s8 + $0xb0] sm:$0xff]   ;;  %v1388_v7 = vld [vmem:[%s1708_s8 + $0xb8] sm:$0xff]   ;;  %v1394_v13 = vld [vmem:[%s1708_s8 + $0x108] sm:$0xff]   ;;  %v1126_v50 = vshrl.u32 %v1125_v48, 7 }
  0x66   : > { %1288 = vmatpush3.bf16.msra.mxu1 %v1366_v49  ;;  %v1395_v14 = vld [vmem:[%s1708_s8 + $0x150] sm:$0xff]   ;;  %v1397_v16 = vld [vmem:[%s1708_s8 + $0x158] sm:$0xff]   ;;  %v1399_v18 = vld [vmem:[%s1708_s8 + $0x160] sm:$0xff]  }
  0x67   : > { %1289 = vmatprep.subr.bf16.mxu1 %v1369_v52  ;;  %v1396_v15 = vld [vmem:[%s1708_s8 + $0x110] sm:$0xff]   ;;  %v1398_v17 = vld [vmem:[%s1708_s8 + $0x118] sm:$0xff]   ;;  %v1400_v19 = vld [vmem:[%s1708_s8 + $0x120] sm:$0xff]   ;;  %vm1127_vm0 = vcmp.ge.s32.totalorder %v1126_v50, 3  ;;  %vm1128_vm1 = vcmp.lt.s32.totalorder %v1126_v50, 7 }
  0x68   : > { %1268 = vmatpush3.bf16.msra.mxu0 %v1368_v51  ;;  %v1401_v20 = vld [vmem:[%s1708_s8 + $0x168] sm:$0xff]   ;;  %v1403_v22 = vld [vmem:[%s1708_s8 + $0x170] sm:$0xff]   ;;  %v1405_v24 = vld [vmem:[%s1708_s8 + $0x178] sm:$0xff]  }
  0x69   : > { %1269 = vmatprep.subr.bf16.mxu0 %v1371_v54  ;;  %v1402_v21 = vld [vmem:[%s1708_s8 + $0x128] sm:$0xff]   ;;  %v1404_v23 = vld [vmem:[%s1708_s8 + $0x130] sm:$0xff]   ;;  %v1406_v25 = vld [vmem:[%s1708_s8 + $0x138] sm:$0xff]  }
  0x6a   : > { %1290 = vmatpush3.bf16.msra.mxu1 %v1370_v53  ;;  %vm1129_vm2 = vmand %vm1127_vm0, %vm1128_vm1 }
  0x6b   : > { %1291 = vmatprep.subr.bf16.mxu1 %v1373_v56 }
  0x6c   : > { %1270 = vmatpush3.bf16.msra.mxu0 %v1372_v55 }
  0x6d   : > { %1271 = vmatprep.subr.bf16.mxu0 %v1375_v58 }
  0x6e   : > { %1292 = vmatpush3.bf16.msra.mxu1 %v1374_v57 }
  0x6f   : > { %1293 = vmatprep.subr.bf16.mxu1 %v1377_v60 }
  0x70   : > { %1272 = vmatpush3.bf16.msra.mxu0 %v1376_v59 }
  0x71   : > { %1273 = vmatprep.subr.bf16.mxu0 %v1379_v62 }
  0x72   : > { %1294 = vmatpush3.bf16.msra.mxu1 %v1378_v61 }
  0x73   : > { %1295 = vmatprep.subr.bf16.mxu1 %v1381_v0 }
  0x74   : > { %1274 = vmatpush3.bf16.msra.mxu0 %v1380_v63 }
  0x75   : > { %1275 = vmatprep.subr.bf16.mxu0 %v1383_v3 }
  0x76   : > { %1296 = vmatpush3.bf16.msra.mxu1 %v1382_v2 }
  0x77   : > { %1297 = vmatprep.subr.bf16.mxu1 %v1385_v5 }
  0x78   : > { %1276 = vmatpush3.bf16.msra.mxu0 %v1384_v4 }
  0x79   : > { %1305 = vmatprep.subr.bf16.mxu0 %v1389_v9 }
  0x7a   : > { %1298 = vmatpush3.bf16.msra.mxu1 %v1388_v7 }
  0x7b   : > { %1038 = vmatmul.mubr.bf16.vlgmr.msra.gmra.mrb[0].mxu0 %v1204_v6 }
  0x7c   : > { %1306 = vmatpush3.bf16.msra.mxu0 %v1392_v11  ;;  %1117 = vmatprep.mubr.bf16.mxu0 %v1209_v8 }
  0x7d   : > { %1078 = vmatmul.mubr.bf16.vlgmr.msra.gmra.mrb[0].mxu1 %v1206_v10  ;;  %1307 = vmatprep.subr.bf16.mxu0 %v1393_v12 }
  0x80   : > { %1308 = vmatpush3.bf16.msra.mxu0 %v1394_v13 }
  0x81   : > { %1309 = vmatprep.subr.bf16.mxu0 %v1395_v14 }
  0x84   : > { %1310 = vmatpush3.bf16.msra.mxu0 %v1396_v15 }
  0x85   : > { %1311 = vmatprep.subr.bf16.mxu0 %v1397_v16 }
  0x88   : > { %1312 = vmatpush3.bf16.msra.mxu0 %v1398_v17 }
  0x89   : > { %1313 = vmatprep.subr.bf16.mxu0 %v1399_v18 }
  0x8c   : > { %1314 = vmatpush3.bf16.msra.mxu0 %v1400_v19 }
  0x8d   : > { %1315 = vmatprep.subr.bf16.mxu0 %v1401_v20 }
  0x90   : > { %1316 = vmatpush3.bf16.msra.mxu0 %v1402_v21 }
  0x91   : > { %1317 = vmatprep.subr.bf16.mxu0 %v1403_v22 }
  0x94   : > { %1318 = vmatpush3.bf16.msra.mxu0 %v1404_v23 }
  0x95   : > { %1319 = vmatprep.subr.bf16.mxu0 %v1405_v24 }
  0x98   : > { %1320 = vmatpush3.bf16.msra.mxu0 %v1406_v25 }
  0x9b   : > { %1118 = vmatmul.mubr.bf16.vlgmr.msra.gmra.mrb[4].mxu0 %v1208_v26 }
  0xd6   : > { %v694_v29 = vpop.permute.xlu0 %693 }
 0x14e   : > { %v1277_v27 = vpop.f32.mrb[0].mxu0 }
 0x14f   : > { %v1278_v28 = vpop.f32.mrb[1].mxu0 }
 0x150   : > { %v1279_v30 = vadd.f32 %v1278_v28, %v1277_v27  ;;  %v1280_v31 = vpop.f32.mrb[2].mxu0  ;;  %v1299_v32 = vpop.f32.mrb[0].mxu1 }
 0x151   : > { %v1281_v33 = vpop.f32.mrb[3].mxu0  ;;  %v1300_v34 = vpop.f32.mrb[1].mxu1 }
 0x152   : > { %v1040_v35 = vadd.f32 %v1279_v30, %v694_v29  ;;  %v1301_v36 = vadd.f32 %v1300_v34, %v1299_v32  ;;  %v1302_v37 = vpop.f32.mrb[2].mxu1 }
 0x153   : > { %v1303_v38 = vpop.f32.mrb[3].mxu1 }
 0x154   : > { %v1080_v39 = vadd.f32 %v1301_v36, %v1040_v35 }
 0x16e   : > { %v1321_v40 = vpop.f32.mrb[4].mxu0 }
 0x16f   : > { %v1322_v41 = vpop.f32.mrb[5].mxu0 }
 0x170   : > { %v1323_v42 = vadd.f32 %v1322_v41, %v1321_v40  ;;  %v1324_v43 = vpop.f32.mrb[6].mxu0 }
 0x171   : > { %v1325_v44 = vpop.f32.mrb[7].mxu0 }
 0x172   : > { %v1120_v45 = vadd.f32 %v1323_v42, %v1080_v39 }
 0x174   : > { %v1258_v46 = vmul.f32 -1.442695, %v1120_v45 }
 0x176   : > { %1409 = vpow2.f32 %v1258_v46 }
 0x180   : > { %v1410_v47 = vpop.eup %1409 }
 0x181   : > { %v1133_v49 = vadd.f32 1.0, %v1410_v47 }
 0x183   : > { %1411 = vrcp.f32 %v1133_v49 }
 0x18d   : > { %v1412_v51 = vpop.eup %1411 }
 0x18e   : > { %v1136_v52 = vsel %vm1129_vm2, %v1412_v51, %v1120_v45 }
 0x18f   : > { %1137 = vst [vmem:[%s589_s18] sm:$0xff] %v1136_v52 }
 0x190 PF: > { %p10_p9 = scmp.ge.s32.totalorder %s1475_s16, 4   ;;  %s1786_s12 = smov %s1431_s13 }
 0x191   : > { %s1787_s13 = smov %s1484_s19  ;;  %s1788_s14 = smov %s1475_s16 }
 0x192   :  { %12 = sbr.rel (!%p10_p9) target bundleno = 2 (0x2), region = 108 }

</bundles_post_ra>
